<compile_context>
chip_gen: v7x
topology: tpu7x:2x2x1
jax: 0.10.0
libtpu: 0.0.40
codegen_flags: <defaults>
</compile_context>

<pallas_src>
import jax
import jax.numpy as jnp
from jax.experimental import pallas as pl
from jax.experimental.pallas import tpu as pltpu

_LANE = 512  # lane-dense last dim: multiple of 128 -> unmasked full-width vst


def _copy_kernel(x_ref, o_ref):
    # Element-wise pass-through on the current VMEM tile.
    o_ref[...] = x_ref[...]


def _round_up(x: int, m: int) -> int:
    return ((x + m - 1) // m) * m


def _sublane_multiple(dtype) -> int:
    # Packed-sublane multiple: 8 for 32-bit, 16 for 16-bit, 32 for 8-bit dtypes.
    itemsize = jnp.dtype(dtype).itemsize
    if itemsize >= 4:
        return 8
    return 8 * (4 // itemsize)


def _max_tile_rows() -> int:
    # 2048 rows x 512 lanes x 4 B = 4 MiB f32 tile (16 MiB double-buffered
    # working set) on v6e / v7x; 1024 rows (8 MiB working set) elsewhere so the
    # v5e 16 MiB scoped-VMEM default is never at risk.
    try:
        kind = jax.devices()[0].device_kind.lower()
    except Exception:  # pragma: no cover - defensive; assume conservative tile
        kind = ""
    if "v6" in kind or "v7" in kind:
        return 2048
    return 1024


def _select_tiling(rows: int, sub: int, max_rows: int):
    """Pick tile rows (multiple of `sub`) and grid length.

    Guarantees >=2 grid blocks whenever rows allow it so the "parallel" grid
    axis can be sharded across both TensorCores on multi-TC parts (v7x).
    """
    half = _round_up(pl.cdiv(rows, 2), sub)
    tile_r = max(sub, min(max_rows, half))
    num_blocks = pl.cdiv(rows, tile_r)
    return tile_r, num_blocks


def _forward_impl(x: jax.Array) -> jax.Array:
    orig_shape = x.shape
    dtype = x.dtype
    n = x.size
    itemsize = jnp.dtype(dtype).itemsize
    sub = _sublane_multiple(dtype)

    ragged = (n % _LANE) != 0
    if not ragged:
        # Fast path: free bitcast reshape, no pad, no trailing slice.
        rows = n // _LANE
        x2d = x.reshape(rows, _LANE)
    else:
        # Ragged fallback: pad the flat tail up to a sublane-aligned row count.
        rows = _round_up(pl.cdiv(n, _LANE), sub)
        flat = x.reshape(-1)
        flat = jnp.pad(flat, (0, rows * _LANE - n))
        x2d = flat.reshape(rows, _LANE)

    tile_r, num_blocks = _select_tiling(rows, sub, _max_tile_rows())
    tile_bytes = tile_r * _LANE * itemsize
    # Actual need: 2 double-buffered tiles in + 2 out, plus headroom. Never ask
    # for all of VMEM (unsafe on v7x's 64 MiB parts).
    vmem_limit = min(4 * tile_bytes + (8 << 20), 32 << 20)
    moved_bytes = 2 * rows * _LANE * itemsize  # one read + one write

    out2d = pl.pallas_call(
        _copy_kernel,
        out_shape=jax.ShapeDtypeStruct((rows, _LANE), dtype),
        grid_spec=pltpu.PrefetchScalarGridSpec(
            num_scalar_prefetch=0,
            grid=(num_blocks,),
            in_specs=[pl.BlockSpec((tile_r, _LANE), lambda i: (i, 0))],
            out_specs=pl.BlockSpec((tile_r, _LANE), lambda i: (i, 0)),
        ),
        compiler_params=pltpu.CompilerParams(
            dimension_semantics=("parallel",),  # shard rows across v7x's 2 TCs
            vmem_limit_bytes=vmem_limit,
        ),
        cost_estimate=pl.CostEstimate(
            flops=0, transcendentals=0, bytes_accessed=moved_bytes
        ),
    )(x2d)

    if not ragged:
        return out2d.reshape(orig_shape)
    return out2d.reshape(-1)[:n].reshape(orig_shape)


# Jit the wrapper so layout ops (reshape / pad / slice) fuse with the kernel.
ddpm_unet_forward = jax.jit(_forward_impl)


# TODO(synk): the cfg-configured UNet body (conv / attention blocks) is not
# present in the reference module, so only the identity forward is kernelized.


if __name__ == "__main__":
    key = jax.random.PRNGKey(0)

    # Small NCHW input consistent with a diffusion-model image batch (fast path).
    x = jax.random.normal(key, (2, 4, 16, 16), dtype=jnp.float32)
    y = jax.block_until_ready(ddpm_unet_forward(x))
    assert y.shape == x.shape and y.dtype == x.dtype
    assert bool(jnp.array_equal(y, x))

    # Ragged-size input exercising the padded fallback path.
    x_odd = jax.random.normal(jax.random.PRNGKey(1), (2, 3, 7, 5), dtype=jnp.float32)
    y_odd = jax.block_until_ready(ddpm_unet_forward(x_odd))
    assert y_odd.shape == x_odd.shape and y_odd.dtype == x_odd.dtype
    assert bool(jnp.array_equal(y_odd, x_odd))

    print("KERNEL_OK")
</pallas_src>

<mosaic_0001>
module attributes {stable_mosaic.version = 11 : i64} {
  func.func @_copy_kernel(%arg0: i32, %arg1: memref<8x512xf32, #tpu.memory_space<vmem>>, %arg2: memref<8x512xf32, #tpu.memory_space<vmem>>) attributes {dimension_semantics = [#tpu.dimension_semantics<parallel>], iteration_bounds = array<i64: 1>, scalar_prefetch = 0 : i64, scratch_operands = 0 : i64, tpu.core_type = #tpu.core_type<tc>, window_params = [{transform_indices = @transform_0, window_bounds = array<i64: 8, 512>}, {transform_indices = @transform_1, window_bounds = array<i64: 8, 512>}]} {
    %c0 = arith.constant 0 : index
    %c0_0 = arith.constant 0 : index
    %0 = vector.load %arg1[%c0, %c0_0] : memref<8x512xf32, #tpu.memory_space<vmem>>, vector<8x512xf32>
    %c0_1 = arith.constant 0 : index
    %c0_2 = arith.constant 0 : index
    %1 = vector.load %arg2[%c0_1, %c0_2] : memref<8x512xf32, #tpu.memory_space<vmem>>, vector<8x512xf32>
    tpu.vector_store %arg2[%c0_1, %c0_2], %0 {strides = array<i32>} : memref<8x512xf32, #tpu.memory_space<vmem>>, vector<8x512xf32>,
    return
  }
  func.func @transform_0(%arg0: i32) -> (i32, i32) {
    %c0_i32 = arith.constant 0 : i32
    %c0_i32_0 = arith.constant 0 : i32
    return %arg0, %c0_i32 : i32, i32
  }
  func.func @transform_1(%arg0: i32) -> (i32, i32) {
    %c0_i32 = arith.constant 0 : i32
    %c0_i32_0 = arith.constant 0 : i32
    return %arg0, %c0_i32 : i32, i32
  }
}

</mosaic_0001>

<bundles_post_ra>
// kernel: _forward_impl.1
= control target key start
LH: loop header
LB: loop body
LE: loop exit
PB: predicated region body
PF: predicated region fallthrough
CT: control target
= control target key end

     0   :  { %s65_s0 = inlined_call_operand.vmem [shape: f32[4,512], index: 0, kind: input, shape index: {}]   ;;  %s66_s1 = inlined_call_operand.vmem [shape: f32[4,512], index: 1, kind: output, shape index: {}]  }
   0x1   :  { %v8_v0 = vld [vmem:[%s65_s0] sm:$0xff]  ;;  %v9_v1 = vld [vmem:[%s65_s0 + $0x8] sm:$0xff] }
   0x2   :  { %31 = vst [vmem:[%s66_s1] sm:$0xff] %v8_v0  ;;  %33 = vst [vmem:[%s66_s1 + $0x8] sm:$0xff] %v9_v1 }

</bundles_post_ra>
